<compile_context>
chip_gen: v7x
topology: tpu7x:2x2x1
jax: 0.10.0
libtpu: 0.0.40
codegen_flags: <defaults>
</compile_context>

<pallas_src>
import functools

import jax
import jax.numpy as jnp
from jax.experimental import pallas as pl
from jax.experimental.pallas import tpu as pltpu


# ----------------------------- glue helpers (plain JAX) -----------------------------

def _squash(x, eps=1e-11):
    sq = jnp.sum(x * x, axis=-1, keepdims=True)
    safe = jnp.sqrt(sq + eps)
    scale = sq / (1.0 + sq)
    return x / safe, scale


# ----------------------------- Pallas kernel -----------------------------

def _recon_kernel(first_ref, sec_ref, scale_ref, mask_ref, wblk_ref, bblk_ref,
                  out_ref):
    """One batch chunk per grid step.

    first_ref : VMEM (bt, N, H)       first capsules, pre-ReLU (f32 or bf16)
    sec_ref   : VMEM (bt, K1*D)       selected+class capsules, lane-concatenated
    scale_ref : VMEM (bt, K1*H)       capsule scales, each repeated H times (f32)
    mask_ref  : VMEM (bt, N, 1)       first-capsule row mask as 0/1 f32
    wblk_ref  : VMEM (K1*D, K1*H)     block-diagonal fc1 weight (W^T blocks)
    bblk_ref  : VMEM (1, K1*H)        fc1 bias tiled K1 times (f32)
    out_ref   : VMEM (bt, N, N)       output adjacency (f32)
    """
    h = first_ref.shape[2]
    k1 = wblk_ref.shape[1] // h
    mxu_dt = first_ref.dtype                       # f32, or bf16 on v6e/v7x path

    # fc1 for all K1 capsules of the whole chunk in ONE MXU pass.  The
    # block-diagonal weight makes the result columns already lane-concatenated:
    #   hcat[b] = [ relu-pre h_{b,0} | h_{b,1} | ... | h_{b,K1-1} ]
    hcat = jnp.dot(sec_ref[...], wblk_ref[...],
                   preferred_element_type=jnp.float32)           # (bt, K1*H) f32
    hcat = jnp.maximum(hcat + bblk_ref[...], 0.0)                # bias + ReLU, f32

    f = jnp.maximum(first_ref[...].astype(jnp.float32), 0.0)     # (bt, N, H)
    # A[b] = [ f_b + h_{b,0} | ... | f_b + h_{b,K1-1} ]   (no per-row slicing)
    f_rep = jnp.concatenate([f] * k1, axis=-1)                   # (bt, N, K1*H)
    a = f_rep + hcat[:, None, :]
    # Exact scale fold: sum_j s_j (f+h_j)(f+h_j)^T == (A * s_rep) @ A^T
    aw = a * scale_ref[...][:, None, :]

    # Single batched gram for the whole chunk (MXU: K = K1*H).
    gram = jnp.einsum('bnk,bmk->bnm',
                      aw.astype(mxu_dt), a.astype(mxu_dt),
                      preferred_element_type=jnp.float32)        # (bt, N, N) f32

    # Zero masked rows (== scatter-back of adj[first_capsule_mask] into zeros).
    out_ref[...] = gram * mask_ref[...]


# ----------------------------- wrapper -----------------------------

@functools.partial(jax.jit, static_argnames=("k", "use_bf16_mxu"))
def reconstruction_layer_forward(first_capsule, second_capsule, class_capsule,
                                 y, first_capsule_mask, w_fc1, b_fc1, k,
                                 use_bf16_mxu=False):
    B, N, H = first_capsule.shape
    D = second_capsule.shape[-1]
    K1 = k + 1

    # ---- selection glue (plain JAX, fused under jit) ----
    cls_sel = jnp.take_along_axis(class_capsule, y[:, None, None], axis=1)
    cls_u, scale1 = _squash(cls_sel)                             # (B,1,D), (B,1,1)
    sec_u, scale = _squash(second_capsule)                       # (B,M,D), (B,M,1)
    _, idx = jax.lax.top_k(scale[..., 0], k)                     # (B,k)
    sec_sel = jnp.take_along_axis(sec_u, idx[..., None], axis=1)      # (B,k,D)
    scale_sel = jnp.take_along_axis(scale, idx[..., None], axis=1)    # (B,k,1)
    sec_cat = jnp.concatenate([sec_sel, cls_u], axis=1)               # (B,K1,D)
    scale_cat = jnp.concatenate([scale_sel, scale1], axis=1)[..., 0]  # (B,K1)

    # ---- kernel operands ----
    # bf16 only for MXU operands (v6e/v7x); all elementwise math stays f32.
    in_dtype = jnp.bfloat16 if use_bf16_mxu else jnp.float32

    first_in = first_capsule.astype(in_dtype)                          # (B,N,H)
    sec_flat = sec_cat.reshape(B, K1 * D).astype(in_dtype)             # (B,K1*D)
    # Block-diagonal fc1 weight: diag blocks are W^T (D,H); bias tiled K1 times.
    w_blk = jnp.kron(jnp.eye(K1, dtype=jnp.float32),
                     w_fc1.T.astype(jnp.float32)).astype(in_dtype)     # (K1*D,K1*H)
    b_blk = jnp.tile(b_fc1.astype(jnp.float32), K1).reshape(1, K1 * H) # (1,K1*H)
    scale_rep = jnp.repeat(scale_cat.astype(jnp.float32), H, axis=1)   # (B,K1*H)
    mask_f = first_capsule_mask.astype(jnp.float32)[:, :, None]        # (B,N,1)

    # ---- batch chunking ----
    # Default: whole batch in ONE grid step (per-step overhead dominates at
    # these sizes).  Split into 2+ sublane-aligned chunks only when that keeps
    # every 2-D block's second-minor dim a multiple of 8 (B >= 16), so the
    # "parallel" axis can shard across the two v7x TensorCores; cap the chunk
    # so the (bt, N, K1*H) intermediates stay small in VMEM for huge batches.
    bt = B
    if B % 2 == 0 and (B // 2) % 8 == 0:
        bt = B // 2
    while bt > 256 and bt % 2 == 0 and (bt // 2) % 8 == 0:
        bt //= 2
    n_chunks = B // bt

    out = pl.pallas_call(
        _recon_kernel,
        out_shape=jax.ShapeDtypeStruct((B, N, N), jnp.float32),
        grid=(n_chunks,),
        in_specs=[
            pl.BlockSpec((bt, N, H), lambda c: (c, 0, 0)),       # first capsules
            pl.BlockSpec((bt, K1 * D), lambda c: (c, 0)),        # selected capsules
            pl.BlockSpec((bt, K1 * H), lambda c: (c, 0)),        # capsule scales
            pl.BlockSpec((bt, N, 1), lambda c: (c, 0, 0)),       # row mask
            pl.BlockSpec((K1 * D, K1 * H), lambda c: (0, 0)),    # block-diag fc1 W
            pl.BlockSpec((1, K1 * H), lambda c: (0, 0)),         # tiled fc1 bias
        ],
        out_specs=pl.BlockSpec((bt, N, N), lambda c: (c, 0, 0)), # contiguous block
        compiler_params=pltpu.CompilerParams(
            dimension_semantics=("parallel",)),                  # independent chunks
    )(first_in, sec_flat, scale_rep, mask_f, w_blk, b_blk)

    return out


# ----------------------------- pure-JAX reference (for validation) -----------------------------

def reference_forward(first_capsule, second_capsule, class_capsule,
                      y, first_capsule_mask, w_fc1, b_fc1, k):
    cls_sel = jnp.take_along_axis(class_capsule, y[:, None, None], axis=1)
    cls_u, scale1 = _squash(cls_sel)
    sec_u, scale = _squash(second_capsule)
    _, idx = jax.lax.top_k(scale[..., 0], k)
    sec_sel = jnp.take_along_axis(sec_u, idx[..., None], axis=1)
    scale_sel = jnp.take_along_axis(scale, idx[..., None], axis=1)
    sec_cat = jnp.concatenate([sec_sel, cls_u], axis=1)                 # (B,K1,D)
    scale_cat = jnp.concatenate([scale_sel, scale1], axis=1)            # (B,K1,1)

    h = jax.nn.relu(jnp.einsum('bkd,hd->bkh', sec_cat, w_fc1) + b_fc1)  # (B,K1,H)
    f = jax.nn.relu(first_capsule)                                      # (B,N,H)
    x = f[:, None, :, :] + h[:, :, None, :]                             # (B,K1,N,H)
    adj = jnp.einsum('bknh,bkmh->bknm', x, x)                           # (B,K1,N,N)
    adj = adj * scale_cat[..., None]
    adj = adj.sum(axis=1)                                               # (B,N,N)
    # adj[mask] scatter-back == zero the masked-out rows
    return adj * first_capsule_mask[:, :, None].astype(adj.dtype)


# ----------------------------- main -----------------------------

if __name__ == "__main__":
    B, N, H = 2, 16, 32        # batch, first capsules, hidden
    M, D = 8, 8                # second capsules, n_dim
    C, K = 4, 3                # n_classes, top-k

    key = jax.random.PRNGKey(0)
    k1, k2, k3, k4, k5, k6, k7 = jax.random.split(key, 7)

    first_capsule = jax.random.normal(k1, (B, N, H), dtype=jnp.float32)
    second_capsule = jax.random.normal(k2, (B, M, D), dtype=jnp.float32)
    class_capsule = jax.random.normal(k3, (B, C, D), dtype=jnp.float32)
    y = jax.random.randint(k4, (B,), 0, C, dtype=jnp.int32)
    first_capsule_mask = jax.random.bernoulli(k5, 0.7, (B, N))

    # fc1 = nn.Linear(n_dim, hidden): weight (H, D), bias (H,)
    w_fc1 = (jax.random.normal(k6, (H, D), dtype=jnp.float32)
             * (1.0 / jnp.sqrt(jnp.float32(D))))
    b_fc1 = jax.random.normal(k7, (H,), dtype=jnp.float32) * 0.1

    ref = reference_forward(
        first_capsule, second_capsule, class_capsule, y,
        first_capsule_mask, w_fc1, b_fc1, K)
    ref = jax.block_until_ready(ref)

    # f32 path (default; v5e-safe)
    out = reconstruction_layer_forward(
        first_capsule, second_capsule, class_capsule, y,
        first_capsule_mask, w_fc1, b_fc1, K)
    out = jax.block_until_ready(out)

    assert out.shape == (B, N, N)
    assert jnp.allclose(out, ref, atol=1e-3, rtol=1e-4), (
        f"mismatch: max abs err {jnp.max(jnp.abs(out - ref))}")

    # bf16-MXU path (v6e/v7x headroom); accumulation stays f32, looser tolerance.
    out_bf16 = reconstruction_layer_forward(
        first_capsule, second_capsule, class_capsule, y,
        first_capsule_mask, w_fc1, b_fc1, K, use_bf16_mxu=True)
    out_bf16 = jax.block_until_ready(out_bf16)

    assert out_bf16.shape == (B, N, N)
    assert jnp.allclose(out_bf16, ref, atol=2.0, rtol=5e-2), (
        f"bf16 mismatch: max abs err {jnp.max(jnp.abs(out_bf16 - ref))}")

    print("KERNEL_OK")
</pallas_src>

<mosaic_0001>
module attributes {stable_mosaic.version = 11 : i64} {
  func.func @_recon_kernel(%arg0: i32, %arg1: memref<2x16x32xf32, #tpu.memory_space<vmem>>, %arg2: memref<2x32xf32, #tpu.memory_space<vmem>>, %arg3: memref<2x128xf32, #tpu.memory_space<vmem>>, %arg4: memref<2x16x1xf32, #tpu.memory_space<vmem>>, %arg5: memref<32x128xf32, #tpu.memory_space<vmem>>, %arg6: memref<1x128xf32, #tpu.memory_space<vmem>>, %arg7: memref<2x16x16xf32, #tpu.memory_space<vmem>>) attributes {dimension_semantics = [#tpu.dimension_semantics<parallel>], iteration_bounds = array<i64: 1>, scalar_prefetch = 0 : i64, scratch_operands = 0 : i64, tpu.core_type = #tpu.core_type<tc>, window_params = [{transform_indices = @transform_0, window_bounds = array<i64: 2, 16, 32>}, {transform_indices = @transform_1, window_bounds = array<i64: 2, 32>}, {transform_indices = @transform_2, window_bounds = array<i64: 2, 128>}, {transform_indices = @transform_3, window_bounds = array<i64: 2, 16, 1>}, {pipeline_mode = #tpu.pipeline_mode<synchronous>, transform_indices = @transform_4, window_bounds = array<i64: 32, 128>}, {pipeline_mode = #tpu.pipeline_mode<synchronous>, transform_indices = @transform_5, window_bounds = array<i64: 1, 128>}, {transform_indices = @transform_6, window_bounds = array<i64: 2, 16, 16>}]} {
    %c0 = arith.constant 0 : index
    %c0_0 = arith.constant 0 : index
    %0 = vector.load %arg2[%c0, %c0_0] : memref<2x32xf32, #tpu.memory_space<vmem>>, vector<2x32xf32>
    %c0_1 = arith.constant 0 : index
    %c0_2 = arith.constant 0 : index
    %1 = vector.load %arg5[%c0_1, %c0_2] : memref<32x128xf32, #tpu.memory_space<vmem>>, vector<32x128xf32>
    %cst = arith.constant dense<0.000000e+00> : vector<2x128xf32>
    %2 = tpu.matmul %0, %1, %cst {dimension_numbers = #tpu.dot_dimension_numbers<[1], [0], [0], [1], [0, 0, 1, 1], [], []>} : vector<2x32xf32>, vector<32x128xf32>, vector<2x128xf32> -> vector<2x128xf32>
    %c0_3 = arith.constant 0 : index
    %c0_4 = arith.constant 0 : index
    %3 = vector.load %arg6[%c0_3, %c0_4] : memref<1x128xf32, #tpu.memory_space<vmem>>, vector<1x128xf32>
    %4 = vector.broadcast %3 : vector<1x128xf32> to vector<2x128xf32>
    %5 = arith.addf %2, %4 : vector<2x128xf32>
    %cst_5 = arith.constant 0.000000e+00 : f32
    %6 = vector.broadcast %cst_5 : f32 to vector<2x128xf32>
    %7 = arith.maximumf %5, %6 : vector<2x128xf32>
    %c0_6 = arith.constant 0 : index
    %c0_7 = arith.constant 0 : index
    %c0_8 = arith.constant 0 : index
    %8 = vector.load %arg1[%c0_6, %c0_7, %c0_8] : memref<2x16x32xf32, #tpu.memory_space<vmem>>, vector<2x16x32xf32>
    %cst_9 = arith.constant 0.000000e+00 : f32
    %9 = vector.broadcast %cst_9 : f32 to vector<2x16x32xf32>
    %10 = arith.maximumf %8, %9 : vector<2x16x32xf32>
    %11 = tpu.concatenate %10, %10, %10, %10 in 2 : vector<2x16x32xf32>, vector<2x16x32xf32>, vector<2x16x32xf32>, vector<2x16x32xf32> -> vector<2x16x128xf32>
    %12 = vector.shape_cast %7 : vector<2x128xf32> to vector<2x1x128xf32>
    %13 = vector.broadcast %12 : vector<2x1x128xf32> to vector<2x16x128xf32>
    %14 = arith.addf %11, %13 : vector<2x16x128xf32>
    %c0_10 = arith.constant 0 : index
    %c0_11 = arith.constant 0 : index
    %15 = vector.load %arg3[%c0_10, %c0_11] : memref<2x128xf32, #tpu.memory_space<vmem>>, vector<2x128xf32>
    %16 = vector.shape_cast %15 : vector<2x128xf32> to vector<2x1x128xf32>
    %17 = vector.broadcast %16 : vector<2x1x128xf32> to vector<2x16x128xf32>
    %18 = arith.mulf %14, %17 : vector<2x16x128xf32>
    "tpu.trace_start"() <{level = 10 : i32, message = "bnk,bmk->bnm"}> : () -> ()
    %cst_12 = arith.constant dense<0.000000e+00> : vector<2x16x16xf32>
    %19 = tpu.matmul %18, %14, %cst_12 {dimension_numbers = #tpu.dot_dimension_numbers<[2], [2], [1], [1], [0, 0, 0, 1, 1, 1], [0], [0]>} : vector<2x16x128xf32>, vector<2x16x128xf32>, vector<2x16x16xf32> -> vector<2x16x16xf32>
    "tpu.trace_stop"() : () -> ()
    %c0_13 = arith.constant 0 : index
    %c0_14 = arith.constant 0 : index
    %c0_15 = arith.constant 0 : index
    %20 = vector.load %arg4[%c0_13, %c0_14, %c0_15] : memref<2x16x1xf32, #tpu.memory_space<vmem>>, vector<2x16x1xf32>
    %21 = vector.broadcast %20 : vector<2x16x1xf32> to vector<2x16x16xf32>
    %22 = arith.mulf %19, %21 : vector<2x16x16xf32>
    %c0_16 = arith.constant 0 : index
    %c0_17 = arith.constant 0 : index
    %c0_18 = arith.constant 0 : index
    %23 = vector.load %arg7[%c0_16, %c0_17, %c0_18] : memref<2x16x16xf32, #tpu.memory_space<vmem>>, vector<2x16x16xf32>
    tpu.vector_store %arg7[%c0_16, %c0_17, %c0_18], %22 {strides = array<i32>} : memref<2x16x16xf32, #tpu.memory_space<vmem>>, vector<2x16x16xf32>,
    return
  }
  func.func @transform_0(%arg0: i32) -> (i32, i32, i32) {
    %c0_i32 = arith.constant 0 : i32
    %c0_i32_0 = arith.constant 0 : i32
    %c0_i32_1 = arith.constant 0 : i32
    return %arg0, %c0_i32, %c0_i32_0 : i32, i32, i32
  }
  func.func @transform_1(%arg0: i32) -> (i32, i32) {
    %c0_i32 = arith.constant 0 : i32
    %c0_i32_0 = arith.constant 0 : i32
    return %arg0, %c0_i32 : i32, i32
  }
  func.func @transform_2(%arg0: i32) -> (i32, i32) {
    %c0_i32 = arith.constant 0 : i32
    %c0_i32_0 = arith.constant 0 : i32
    return %arg0, %c0_i32 : i32, i32
  }
  func.func @transform_3(%arg0: i32) -> (i32, i32, i32) {
    %c0_i32 = arith.constant 0 : i32
    %c0_i32_0 = arith.constant 0 : i32
    %c0_i32_1 = arith.constant 0 : i32
    return %arg0, %c0_i32, %c0_i32_0 : i32, i32, i32
  }
  func.func @transform_4(%arg0: i32) -> (i32, i32) {
    %c0_i32 = arith.constant 0 : i32
    %c0_i32_0 = arith.constant 0 : i32
    %c0_i32_1 = arith.constant 0 : i32
    return %c0_i32, %c0_i32_0 : i32, i32
  }
  func.func @transform_5(%arg0: i32) -> (i32, i32) {
    %c0_i32 = arith.constant 0 : i32
    %c0_i32_0 = arith.constant 0 : i32
    %c0_i32_1 = arith.constant 0 : i32
    return %c0_i32, %c0_i32_0 : i32, i32
  }
  func.func @transform_6(%arg0: i32) -> (i32, i32, i32) {
    %c0_i32 = arith.constant 0 : i32
    %c0_i32_0 = arith.constant 0 : i32
    %c0_i32_1 = arith.constant 0 : i32
    return %arg0, %c0_i32, %c0_i32_0 : i32, i32, i32
  }
}

</mosaic_0001>

<bundles_post_ra>
// kernel: tile.8
= control target key start
LH: loop header
LB: loop body
LE: loop exit
PB: predicated region body
PF: predicated region fallthrough
CT: control target
= control target key end

     0   :  { %s22_s0 = inlined_call_operand.vmem [shape: f32[32], index: 0, kind: input, shape index: {}]   ;;  %s23_s1 = inlined_call_operand.vmem [shape: f32[4,32], index: 1, kind: output, shape index: {}]  }
   0x1   :  { %v4_v0 = vld [vmem:[%s22_s0] ss:$0 sm:$0xff] }
   0x2   :  { %5 = vst [vmem:[%s23_s1] sm:$0xf] %v4_v0 }

// kernel: tile.9
= control target key start
LH: loop header
LB: loop body
LE: loop exit
PB: predicated region body
PF: predicated region fallthrough
CT: control target
= control target key end

     0   :  { %vm7_vm0 = vcmask 261120   ;;  %s37_s8 = smov 32   ;;  %s38_s9 = smov 64   ;;  %vm13_vm1 = vcmask 1048320   ;;  %vm19_vm2 = vcmask 785920   ;;  %vm25_vm3 = vcmask 523520   ;;  %s55_s0 = inlined_call_operand.vmem [shape: f32[4,32], index: 0, kind: input, shape index: {}]   ;;  %s56_s1 = inlined_call_operand.vmem [shape: f32[1,128], index: 1, kind: output, shape index: {}]  }
   0x1   :  { %v4_v0 = vld [vmem:[%s55_s0] sm:$0xf]  ;;  %s36_s0 = smov 96  }
   0x2   :  { %5 = vst [vmem:[#allocation1] sm:$0xf] %v4_v0 }
   0x9   :  { %v10_v1 = vld [vmem:[#allocation1 + $0x3] sm:$0x1]   ;;  %v22_v2 = vld [vmem:[#allocation1 + $0x1] sm:$0x1]   ;;  %v6_v3 = vld [vmem:[#allocation1] sm:$0x1]  }
   0xa   :  { %11 = vrot.lane.b32.xlu0 %v10_v1, %s36_s0  ;;  %23 = vrot.lane.b32.xlu1 %v22_v2, %s37_s8  ;;  %v16_v4 = vld [vmem:[#allocation1 + $0x2] sm:$0x1]   ;;  %8 = vst.msk [vmem:[#allocation0] sm:$0x1] %vm7_vm0, %v6_v3  }
   0xe   :  { %17 = vrot.lane.b32.xlu0 %v16_v4, %s38_s9 }
  0x7c   :  { %v12_v5 = vpop.permute.xlu0 %11   ;;  %v24_v6 = vpop.permute.xlu1 %23  }
  0x7d   :  { %14 = vst.msk [vmem:[#allocation0] sm:$0x1] %vm13_vm1, %v12_v5  }
  0x80   :  { %v18_v7 = vpop.permute.xlu0 %17  }
  0x81   :  { %20 = vst.msk [vmem:[#allocation0] sm:$0x1] %vm19_vm2, %v18_v7  }
  0x82   :  { %26 = vst.msk [vmem:[#allocation0] sm:$0x1] %vm25_vm3, %v24_v6  }
  0x89   :  { %v30_v8 = vld [vmem:[#allocation0] sm:$0x1] }
  0x8a   :  { %32 = vst [vmem:[%s56_s1] sm:$0x1] %v30_v8 }

// kernel: reconstruction_layer_forward.1
= control target key start
LH: loop header
LB: loop body
LE: loop exit
PB: predicated region body
PF: predicated region fallthrough
CT: control target
= control target key end

     0   :  { %v539_v3 = vmov 0.0|0.0   ;;  %vm540_vm0 = vmmov 0   ;;  %v541_v6 = vmov 0.0   ;;  %s667_s0 = inlined_call_operand.vmem [shape: f32[2,16,32], index: 0, kind: input, shape index: {}]   ;;  %s668_s1 = inlined_call_operand.vmem [shape: f32[2,32], index: 1, kind: input, shape index: {}]   ;;  %s669_s2 = inlined_call_operand.vmem [shape: f32[2,128], index: 2, kind: input, shape index: {}]   ;;  %s670_s3 = inlined_call_operand.vmem [shape: f32[2,16,1], index: 3, kind: input, shape index: {}]   ;;  %s671_s4 = inlined_call_operand.vmem [shape: f32[32,128], index: 4, kind: input, shape index: {}]   ;;  %s672_s5 = inlined_call_operand.vmem [shape: f32[1,128], index: 5, kind: input, shape index: {}]   ;;  %s673_s6 = inlined_call_operand.hbm [shape: f32[2,16,16], index: 6, kind: output, shape index: {}]  }
   0x1   :  { %v25_v0 = vld [vmem:[%s671_s4] sm:$0xff]  ;;  %v26_v1 = vld [vmem:[%s671_s4 + $0x8] sm:$0xff]  ;;  %v27_v2 = vld [vmem:[%s671_s4 + $0x10] sm:$0xff]  ;;  %488 = vmatprep.subr.bf16.mxu0 %v539_v3  ;;  %471 = vmatprep.mubr.msk.f32.mxu0 %vm540_vm0, %v541_v6 }
   0x2   :  { %v489_v4 = vpack.c.bf16 %v26_v1, %v25_v0  ;;  %v28_v5 = vld [vmem:[%s671_s4 + $0x18] sm:$0xff]  ;;  %v111_v7 = vld [vmem:[%s667_s0] sm:$0xff]  ;;  %v113_v9 = vld [vmem:[%s667_s0 + $0x10] sm:$0xff] }
   0x3   :  { %v600_v8 = vmax.f32 %v111_v7, 0.0  ;;  %v112_v10 = vld [vmem:[%s667_s0 + $0x8] sm:$0xff]  ;;  %v114_v11 = vld [vmem:[%s667_s0 + $0x18] sm:$0xff]  ;;  %v492_v12 = vpack.c.bf16 %v28_v5, %v27_v2  ;;  %v611_v13 = vmax.f32 %v113_v9, 0.0 }
   0x4   :  { %490 = vmatpush3.bf16.msra.mxu0 %v489_v4 }
   0x5   :  { %11 = vsyncpa [#allocation3], 0  ;;  %491 = vmatprep.subr.bf16.mxu0 %v539_v3  ;;  %s542_s4 = smov 32   ;;  %v116_v14 = vmax.f32 %v112_v10, 0.0  ;;  %v118_v15 = vmax.f32 %v114_v11, 0.0  ;;  %vm36_vm1 = vcmask 261120   ;;  %v177_v30 = vlaneseq }
   0x6   :  { %123 = vrot.lane.b32.xlu0 %v600_v8, %s542_s4  ;;  %127 = vrot.lane.b32.xlu1 %v611_v13, %s542_s4  ;;  %v24_v16 = vld [vmem:[%s668_s1] sm:$0x3]  ;;  %s543_s0 = smov 64   ;;  %s544_s15 = smov 96   ;;  %v399_v17 = vld [vmem:[%s670_s3 + $0x8] sm:$0xff]  ;;  %v545_v19 = vmov 0  }
   0x7   :  { %v398_v18 = vld [vmem:[%s670_s3] sm:$0xff]  ;;  %514 = vset.pattern.permute.xlu1 %v545_v19  ;;  %513 = vset.pattern.permute.xlu0 %v545_v19  ;;  %v400_v20 = vld [vmem:[%s670_s3 + $0x10] sm:$0xff]  ;;  %v401_v21 = vld [vmem:[%s670_s3 + $0x18] sm:$0xff]  ;;  %v546_v28 = vmov 1966171168   ;;  %v178_v34 = vshrl.u32 %v177_v30, 7 }
   0x8   :  { %493 = vmatpush3.bf16.msra.mxu0 %v492_v12  ;;  %v175_v29 = vunpack.c.l.s4 %v546_v28  ;;  %v447_v35 = vld [vmem:[%s672_s5] ss:$0 sm:$0xff]  ;;  %vm163_vm2 = vcmask 523264   ;;  %vm168_vm3 = vcmask 785408   ;;  %vm426_vm4 = vcmask 130048  }
   0x9   :  { %v449_v36 = vld.sshfl [vmem:[%s669_s2] sm:$0x11 pattern:$0x75316420]  ;;  %v198_v49 = vsub.s32 0, %v178_v34  ;;  %s547_s2 = smov [#allocation2]  }
   0xa   :  { %125 = vrot.lane.b32.xlu0 %v116_v14, %s542_s4  ;;  %129 = vrot.lane.b32.xlu1 %v118_v15, %s542_s4  ;;  %v176_v33 = vunpack.c.0.s8 %v175_v29  ;;  %v219_v41 = vcombine.high %v449_v36, %v449_v36  ;;  %s436_s5 = sshll.u32 %s547_s2, 4  ;;  %s437_s5 = int_to_ptr.vmem [resolvable:$true] %s436_s5 }
   0xb   :  { %472 = vmatmul.mubr.msk.f32.vlgmr.msra.gmra.mrb[0].mxu0 %vm36_vm1, %v24_v16  ;;  %s515_s26 = scalar_lea.vmem %s437_s5, 512  ;;  %p520_p1 = scmp.lt.s32.totalorder %s437_s5, %s437_s5 }
   0xc   :  { %v179_v39 = vsub.s32 %v176_v33, %v178_v34  ;;  %p516_p0 = scmp.ne.s32.totalorder %s437_s5, %s515_s26  ;;  %p521_p2 = scmp.lt.s32.totalorder %s515_s26, %s515_s26 }
   0xe   :  { %135 = vrot.lane.b32.xlu0 %v600_v8, %s543_s0  ;;  %137 = vrot.lane.b32.xlu1 %v116_v14, %s543_s0  ;;  %v226_v47 = vrot.slane %v449_v36, %v179_v39  ;;  %v233_v52 = vrot.slane %v219_v41, %v179_v39  ;;  %p522_p3 = por %p521_p2, %p520_p1 }
  0x10   :  { %v237_v57 = vrot.slane %v226_v47, %v198_v49  ;;  %v241_v5 = vrot.slane %v233_v52, %v198_v49  ;;  %p523_p4 = pnand %p522_p3, %p516_p0 }
  0x12   :  { %139 = vrot.lane.b32.xlu0 %v611_v13, %s543_s0  ;;  %141 = vrot.lane.b32.xlu1 %v118_v15, %s543_s0 }
  0x16   :  { %147 = vrot.lane.b32.xlu0 %v600_v8, %s544_s15  ;;  %149 = vrot.lane.b32.xlu1 %v116_v14, %s544_s15 }
  0x1a   :  { %151 = vrot.lane.b32.xlu0 %v611_v13, %s544_s15  ;;  %153 = vrot.lane.b32.xlu1 %v118_v15, %s544_s15 }
  0x1e   :  { %409 = vperm.xlu1 %514, %v399_v17   ;;  %404 = vperm.xlu0 %513, %v398_v18  }
  0x22   :  { %414 = vperm.xlu1 %514, %v400_v20   ;;  %419 = vperm.xlu0 %513, %v401_v21  }
  0x78   :  { %v124_v22 = vpop.permute.xlu0 %123  ;;  %v128_v23 = vpop.permute.xlu1 %127 }
  0x79   :  { %v159_v45 = vsel %vm36_vm1, %v600_v8, %v124_v22  ;;  %v161_v50 = vsel %vm36_vm1, %v611_v13, %v128_v23 }
  0x7c   :  { %v126_v24 = vpop.permute.xlu0 %125  ;;  %v130_v25 = vpop.permute.xlu1 %129 }
  0x7d   :  { %v160_v46 = vsel %vm36_vm1, %v116_v14, %v126_v24  ;;  %v162_v51 = vsel %vm36_vm1, %v118_v15, %v130_v25 }
  0x80   :  { %v136_v26 = vpop.permute.xlu0 %135  ;;  %v138_v27 = vpop.permute.xlu1 %137 }
  0x81   :  { %v164_v53 = vsel %vm163_vm2, %v159_v45, %v136_v26  ;;  %v165_v54 = vsel %vm163_vm2, %v160_v46, %v138_v27 }
  0x84   :  { %v140_v31 = vpop.permute.xlu0 %139  ;;  %v142_v32 = vpop.permute.xlu1 %141 }
  0x85   :  { %v166_v58 = vsel %vm163_vm2, %v161_v50, %v140_v31  ;;  %v167_v59 = vsel %vm163_vm2, %v162_v51, %v142_v32 }
  0x88   :  { %v148_v42 = vpop.permute.xlu0 %147  ;;  %v150_v43 = vpop.permute.xlu1 %149 }
  0x89   :  { %v169_v0 = vsel %vm168_vm3, %v164_v53, %v148_v42  ;;  %v170_v1 = vsel %vm168_vm3, %v165_v54, %v150_v43 }
  0x8c   :  { %v152_v60 = vpop.permute.xlu0 %151  ;;  %v154_v61 = vpop.permute.xlu1 %153 }
  0x8d   :  { %v171_v6 = vsel %vm168_vm3, %v166_v58, %v152_v60  ;;  %v172_v7 = vsel %vm168_vm3, %v167_v59, %v154_v61 }
  0x9d   :  { %v405_v16 = vpop.permute.xlu0 %404  ;;  %v410_v17 = vpop.permute.xlu1 %409 }
  0xa1   :  { %v420_v21 = vpop.permute.xlu0 %419  ;;  %v415_v24 = vpop.permute.xlu1 %414 }
  0xde   :  { %v106_v37 = vpop.f32.mrb[0].mxu0 }
  0xdf   :  { %v107_v38 = vadd.f32 %v447_v35, %v106_v37  ;;  %v473_v40 = vpop.f32.mrb[1].mxu0 }
  0xe1   :  { %v110_v44 = vmax.f32 %v107_v38, 0.0 }
  0xe3   :  { %v180_v48 = vrot.slane %v110_v44, %v179_v39 }
  0xe5   :  { %v181_v55 = vcombine.high %v180_v48, %v180_v48  ;;  %v188_v56 = vrot.slane %v180_v48, %v179_v39 }
  0xe7   :  { %v195_v62 = vrot.slane %v181_v55, %v179_v39  ;;  %v199_v63 = vrot.slane %v188_v56, %v198_v49 }
  0xe9   :  { %v206_v2 = vadd.f32 %v199_v63, %v169_v0  ;;  %v207_v3 = vadd.f32 %v199_v63, %v170_v1  ;;  %v203_v4 = vrot.slane %v195_v62, %v198_v49 }
  0xeb   :  { %v494_v8 = vpack.c.bf16 %v207_v3, %v206_v2  ;;  %v244_v9 = vmul.f32 %v237_v57, %v206_v2  ;;  %v208_v10 = vadd.f32 %v203_v4, %v171_v6  ;;  %v209_v11 = vadd.f32 %v203_v4, %v172_v7 }
  0xec   :  { %v245_v14 = vmul.f32 %v237_v57, %v207_v3 }
  0xed   :  { %495 = vmatprep.subr.bf16.mxu1 %v494_v8  ;;  %478 = vmatprep.mubr.f32.mxu1 %v244_v9  ;;  %v498_v12 = vpack.c.bf16 %v209_v11, %v208_v10  ;;  %v246_v13 = vmul.f32 %v241_v5, %v208_v10  ;;  %v247_v15 = vmul.f32 %v241_v5, %v209_v11 }
  0xee   :  { %497 = vmatpush3.bf16.xpose.msra.mxu1 %v494_v8 }
  0xef   :  { %499 = vmatprep.subr.bf16.mxu0 %v498_v12  ;;  %485 = vmatprep.mubr.f32.mxu0 %v246_v13 }
  0xf0   :  { %501 = vmatpush3.bf16.xpose.msra.mxu0 %v498_v12 }
  0xf5   :  { %479 = vmatmul.mubr.f32.vlgmr.msra.gmra.mrb[0].mxu1 %v245_v14 }
  0xf7   :  { %486 = vmatmul.mubr.f32.vlgmr.msra.gmra.mrb[2].mxu0 %v247_v15 }
 0x1c8   :  { %v480_v18 = vpop.f32.mrb[0].mxu1 }
 0x1c9   :  { %v423_v19 = vmul.f32 %v480_v18, %v410_v17  ;;  %v314_v20 = vpop.f32.mrb[1].mxu1 }
 0x1ca   :  { %v422_v22 = vmul.f32 %v405_v16, %v314_v20  ;;  %v487_v23 = vpop.f32.mrb[2].mxu0 }
 0x1cb   :  { %428 = vst.msk [vmem:[#allocation2 + $0x8] sm:$0xff] %vm426_vm4, %v423_v19  ;;  %v425_v25 = vmul.f32 %v487_v23, %v420_v21  ;;  %v389_v26 = vpop.f32.mrb[3].mxu0 }
 0x1cc   :  { %427 = vst.msk [vmem:[#allocation2] sm:$0xff] %vm426_vm4, %v422_v22  ;;  %v424_v27 = vmul.f32 %v415_v24, %v389_v26 }
 0x1cd   :  { %430 = vst.msk [vmem:[#allocation2 + $0x18] sm:$0xff] %vm426_vm4, %v425_v25 }
 0x1ce   :  { %429 = vst.msk [vmem:[#allocation2 + $0x10] sm:$0xff] %vm426_vm4, %v424_v27 }
 0x1cf   :  { %526 = shalt.err (!%p523_p4)
}
 0x1d0   :  { %s527_s29 = scalar_lea.hbm %s673_s6, 512 }
 0x1d1   :  { %p528_p5 = scmp.ne.s32.totalorder %s673_s6, %s527_s29  ;;  %p531_p6 = scmp.lt.u32.totalorder %s527_s29, %s673_s6 }
 0x1d3   :  { %p533_p7 = pnand %p531_p6, %p528_p5 }
 0x1d5   :  { %536 = shalt.err (!%p533_p7)
}
 0x1d6   :  { %s548_s10 = smov 128   ;;  %s549_s11 = smov 8  }
 0x1d7   :  { %442 = dma.vmem_to_hbm [thread:$0]  %s437_s5, 512, %s673_s6, [#allocation3], %s548_s10, %s548_s10, %s549_s11  }
 0x1d8   :  { %537 = dma.done.wait [#allocation3], 512  }
 0x1d9   :  { %538 = vsyncadd [#allocation3], 4294966784 }
 0x1da   :  { %446 = vsyncpa [#allocation3], 1 }

</bundles_post_ra>
